<compile_context>
chip_gen: v7x
topology: tpu7x:2x2x1
jax: 0.10.0
libtpu: 0.0.40
codegen_flags: <defaults>
</compile_context>

<pallas_src>
import jax
import jax.numpy as jnp
from jax.experimental import pallas as pl
from jax.experimental.pallas import tpu as pltpu

# ---------------------------------------------------------------------------
# Model hyper-parameters (mirrors CVAE(input_dim=9, condition_dim=9,
# latent_dim=4, hidden_dims=[32, 16], activation_function='relu')).
# ---------------------------------------------------------------------------
INPUT_DIM = 9          # positions: cx..sz
CONDITION_DIM = 9      # momenta:  pcx..psz
LATENT_DIM = 4
HIDDEN_DIMS = (32, 16)
BATCH = 8              # bias rows in the params slab are pre-broadcast to 8

WPAD = 32              # every weight block zero-padded to (WPAD, WPAD)
NUM_BLOCKS = 7         # enc1, enc2, heads, dec1, dec2, dec_out, biases
BIAS_LANE = 31         # constant-1 lane used to fold enc1/dec1 biases in
OUT_WIDTH = WPAD       # packed output: x_recon(0..8) | mu(16..19) | logvar(20..23)
_MU_OFF = 16
_LV_OFF = 20


def cvae_kernel(in_ref, w_ref, out_ref):
    f32 = jnp.float32
    xy = in_ref[0]      # (B,32): x lanes 0..8 | y lanes 9..17 | 1.0 @ lane 31
    yd = in_ref[1]      # (B,32): y lanes 0..8 | 1.0 @ lane 31
    eps = in_ref[2]     # (B,32): eps at lanes 20..23 (aligned with logvar), else 0

    B = xy.shape[0]
    lane = jax.lax.broadcasted_iota(jnp.int32, (B, WPAD), 1)

    # ----- encoder (layer-1 bias folded into the matmul via the 1-lane) -----
    h = jnp.maximum(jnp.dot(xy, w_ref[0], preferred_element_type=f32), 0.0)
    h = jnp.maximum(jnp.dot(h, w_ref[1], preferred_element_type=f32)
                    + w_ref[6, 0:8, :], 0.0)

    # fused mu|logvar heads; columns already sit at the output lanes
    # (mu @ 16..19, logvar @ 20..23, EXACT zeros elsewhere).
    heads = jnp.dot(h, w_ref[2], preferred_element_type=f32) + w_ref[6, 8:16, :]

    # ----- clamp + reparameterize, full-width (clip BEFORE exp: no inf*0) -----
    heads_c = jnp.clip(heads, -10.0, 10.0)
    std = jnp.exp(0.5 * heads_c)                       # finite on every lane
    mu_only = jnp.where((lane >= _MU_OFF) & (lane < _MU_OFF + LATENT_DIM),
                        heads, 0.0)                    # raw mu at 16..19 only
    # decoder-1 input: [y (0..8) | mu (16..19) | eps*std (20..23) | 1 (31)]
    d_in = yd + mu_only + eps * std

    # ----- decoder (dec1 z-weights duplicated onto mu- and eps*std-lanes,
    #        bias via the 1-lane) -----
    d = jnp.maximum(jnp.dot(d_in, w_ref[3], preferred_element_type=f32), 0.0)
    d = jnp.maximum(jnp.dot(d, w_ref[4], preferred_element_type=f32)
                    + w_ref[6, 16:24, :], 0.0)
    x_recon = jnp.dot(d, w_ref[5], preferred_element_type=f32) + w_ref[6, 24:32, :]
    # INVARIANT: x_recon lanes 9..31 are exactly zero (dec_out weight cols and
    # bias cols >= 9 are zero-padded), so the add below cannot corrupt the
    # mu / logvar lanes of the packed output.

    # ----- pack output in-register: x_recon | mu(raw) | logvar(clipped) -----
    heads_out = jnp.where((lane >= _LV_OFF) & (lane < _LV_OFF + LATENT_DIM),
                          heads_c, heads)
    out_ref[...] = x_recon + heads_out                 # single full-tile store


# ---------------------------------------------------------------------------
# Parameter construction / packing
# ---------------------------------------------------------------------------
def init_params(key):
    """Deterministic PyTorch-Linear-style init (uniform +-1/sqrt(fan_in)).
    Weights stored as [in, out] (already transposed for x @ W)."""
    params = {}

    def linear(k, fan_in, fan_out, name):
        kw, kb = jax.random.split(k)
        bound = 1.0 / jnp.sqrt(float(fan_in))
        params[name + "_w"] = jax.random.uniform(
            kw, (fan_in, fan_out), jnp.float32, -bound, bound)
        params[name + "_b"] = jax.random.uniform(
            kb, (1, fan_out), jnp.float32, -bound, bound)

    keys = jax.random.split(key, 7)
    h1, h2 = HIDDEN_DIMS
    linear(keys[0], INPUT_DIM + CONDITION_DIM, h1, "enc1")
    linear(keys[1], h1, h2, "enc2")
    linear(keys[2], h2, LATENT_DIM, "fc_mu")
    linear(keys[3], h2, LATENT_DIM, "fc_logvar")
    linear(keys[4], LATENT_DIM + CONDITION_DIM, h2, "dec1")
    linear(keys[5], h2, h1, "dec2")
    linear(keys[6], h1, INPUT_DIM, "dec_out")
    return params


def prepare_params(params):
    """One-time packing of every layer into ONE padded params slab
    (hoisted out of the per-call path)."""
    h1, h2 = HIDDEN_DIMS
    L = LATENT_DIM
    W = jnp.zeros((NUM_BLOCKS, WPAD, WPAD), jnp.float32)

    # block 0: encoder layer 1, fused [x | y | 1] -> 32
    W = W.at[0, :INPUT_DIM + CONDITION_DIM, :h1].set(params["enc1_w"])
    W = W.at[0, BIAS_LANE, :h1].set(params["enc1_b"].reshape(-1))

    # block 1: encoder layer 2 (32 -> 16)
    W = W.at[1, :h1, :h2].set(params["enc2_w"])

    # block 2: fused mu|logvar heads, columns placed at output lanes 16..23
    W = W.at[2, :h2, _MU_OFF:_MU_OFF + L].set(params["fc_mu_w"])
    W = W.at[2, :h2, _LV_OFF:_LV_OFF + L].set(params["fc_logvar_w"])

    # block 3: decoder layer 1, fused [y | mu | eps*std | 1] -> 16
    W = W.at[3, :CONDITION_DIM, :h2].set(params["dec1_w"][L:])        # y rows 0..8
    W = W.at[3, _MU_OFF:_MU_OFF + L, :h2].set(params["dec1_w"][:L])   # z rows (mu)
    W = W.at[3, _LV_OFF:_LV_OFF + L, :h2].set(params["dec1_w"][:L])   # z rows (eps*std)
    W = W.at[3, BIAS_LANE, :h2].set(params["dec1_b"].reshape(-1))

    # block 4: decoder layer 2 (16 -> 32)
    W = W.at[4, :h2, :h1].set(params["dec2_w"])

    # block 5: decoder output layer (32 -> 9)
    W = W.at[5, :h1, :INPUT_DIM].set(params["dec_out_w"])

    # block 6: remaining biases pre-broadcast to BATCH(=8) rows each
    def bcast(vec):
        vec = vec.reshape(1, -1)
        return jnp.broadcast_to(vec, (BATCH, vec.shape[1]))

    W = W.at[6, 0:8, :h2].set(bcast(params["enc2_b"]))
    W = W.at[6, 8:16, _MU_OFF:_MU_OFF + L].set(bcast(params["fc_mu_b"]))
    W = W.at[6, 8:16, _LV_OFF:_LV_OFF + L].set(bcast(params["fc_logvar_b"]))
    W = W.at[6, 16:24, :h1].set(bcast(params["dec2_b"]))
    W = W.at[6, 24:32, :INPUT_DIM].set(bcast(params["dec_out_b"]))
    return W


# ---------------------------------------------------------------------------
# Forward pass
# ---------------------------------------------------------------------------
@jax.jit
def cvae_forward(x, y, eps, w_slab):
    B = x.shape[0]
    assert B == BATCH, "bias rows are pre-broadcast to BATCH=8 in the params slab"

    # Single zero-padded input slab (one prologue DMA instead of three).
    slab = jnp.zeros((3, B, WPAD), jnp.float32)
    slab = slab.at[0, :, :INPUT_DIM].set(x)
    slab = slab.at[0, :, INPUT_DIM:INPUT_DIM + CONDITION_DIM].set(y)
    slab = slab.at[0, :, BIAS_LANE].set(1.0)
    slab = slab.at[1, :, :CONDITION_DIM].set(y)
    slab = slab.at[1, :, BIAS_LANE].set(1.0)
    slab = slab.at[2, :, _LV_OFF:_LV_OFF + LATENT_DIM].set(eps)

    vmem = pltpu.MemorySpace.VMEM
    out = pl.pallas_call(
        cvae_kernel,
        out_shape=jax.ShapeDtypeStruct((B, OUT_WIDTH), jnp.float32),
        in_specs=[pl.BlockSpec(memory_space=vmem)] * 2,
        out_specs=pl.BlockSpec(memory_space=vmem),
        cost_estimate=pl.CostEstimate(
            flops=35_584, transcendentals=256, bytes_accessed=32_768),
    )(slab, w_slab)

    x_recon = out[:, :INPUT_DIM]
    mu = out[:, _MU_OFF:_MU_OFF + LATENT_DIM]
    logvar = out[:, _LV_OFF:_LV_OFF + LATENT_DIM]
    return x_recon, mu, logvar


def cvae_forward_ref(x, y, eps, params):
    """Pure-JAX reference matching the PyTorch forward."""
    xy = jnp.concatenate([x, y], axis=1)
    h = jnp.maximum(xy @ params["enc1_w"] + params["enc1_b"], 0.0)
    h = jnp.maximum(h @ params["enc2_w"] + params["enc2_b"], 0.0)
    mu = h @ params["fc_mu_w"] + params["fc_mu_b"]
    logvar = jnp.clip(h @ params["fc_logvar_w"] + params["fc_logvar_b"], -10.0, 10.0)
    z = mu + eps * jnp.exp(0.5 * logvar)
    zy = jnp.concatenate([z, y], axis=1)
    d = jnp.maximum(zy @ params["dec1_w"] + params["dec1_b"], 0.0)
    d = jnp.maximum(d @ params["dec2_w"] + params["dec2_b"], 0.0)
    x_recon = d @ params["dec_out_w"] + params["dec_out_b"]
    return x_recon, mu, logvar


if __name__ == "__main__":
    key = jax.random.PRNGKey(0)
    kx, ky, keps, kp = jax.random.split(key, 4)

    x = jax.random.normal(kx, (BATCH, INPUT_DIM), jnp.float32)       # positions
    y = jax.random.normal(ky, (BATCH, CONDITION_DIM), jnp.float32)   # momenta
    # torch.randn_like(std) equivalent -- supplied explicitly for determinism.
    eps = jax.random.normal(keps, (BATCH, LATENT_DIM), jnp.float32)

    params = init_params(kp)
    w_slab = prepare_params(params)     # one-time weight/bias slab packing

    x_recon, mu, logvar = cvae_forward(x, y, eps, w_slab)
    jax.block_until_ready((x_recon, mu, logvar))

    # sanity check vs pure-JAX reference
    xr_ref, mu_ref, lv_ref = cvae_forward_ref(x, y, eps, params)
    assert jnp.allclose(x_recon, xr_ref, atol=1e-4, rtol=1e-4)
    assert jnp.allclose(mu, mu_ref, atol=1e-4, rtol=1e-4)
    assert jnp.allclose(logvar, lv_ref, atol=1e-4, rtol=1e-4)

    print("KERNEL_OK")
</pallas_src>

<mosaic_0001>
module attributes {stable_mosaic.version = 11 : i64} {
  func.func @cvae_kernel(%arg0: memref<3x8x32xf32, #tpu.memory_space<vmem>>, %arg1: memref<7x32x32xf32, #tpu.memory_space<vmem>>, %arg2: memref<8x32xf32, #tpu.memory_space<vmem>>) attributes {dimension_semantics = [], scalar_prefetch = 0 : i64, scratch_operands = 0 : i64, tpu.core_type = #tpu.core_type<tc>} {
    %c0 = arith.constant 0 : index
    %c0_0 = arith.constant 0 : index
    %c0_1 = arith.constant 0 : index
    %0 = vector.load %arg0[%c0, %c0_0, %c0_1] : memref<3x8x32xf32, #tpu.memory_space<vmem>>, vector<1x8x32xf32>
    %1 = vector.shape_cast %0 : vector<1x8x32xf32> to vector<8x32xf32>
    %c1 = arith.constant 1 : index
    %c0_2 = arith.constant 0 : index
    %c0_3 = arith.constant 0 : index
    %2 = vector.load %arg0[%c1, %c0_2, %c0_3] : memref<3x8x32xf32, #tpu.memory_space<vmem>>, vector<1x8x32xf32>
    %3 = vector.shape_cast %2 : vector<1x8x32xf32> to vector<8x32xf32>
    %c2 = arith.constant 2 : index
    %c0_4 = arith.constant 0 : index
    %c0_5 = arith.constant 0 : index
    %4 = vector.load %arg0[%c2, %c0_4, %c0_5] : memref<3x8x32xf32, #tpu.memory_space<vmem>>, vector<1x8x32xf32>
    %5 = vector.shape_cast %4 : vector<1x8x32xf32> to vector<8x32xf32>
    %6 = tpu.iota {dimensions = array<i32: 1>} : vector<8x32xi32>
    %c0_6 = arith.constant 0 : index
    %c0_7 = arith.constant 0 : index
    %c0_8 = arith.constant 0 : index
    %7 = vector.load %arg1[%c0_6, %c0_7, %c0_8] : memref<7x32x32xf32, #tpu.memory_space<vmem>>, vector<1x32x32xf32>
    %8 = vector.shape_cast %7 : vector<1x32x32xf32> to vector<32x32xf32>
    %cst = arith.constant dense<0.000000e+00> : vector<8x32xf32>
    %9 = tpu.matmul %1, %8, %cst {dimension_numbers = #tpu.dot_dimension_numbers<[1], [0], [0], [1], [0, 0, 1, 1], [], []>} : vector<8x32xf32>, vector<32x32xf32>, vector<8x32xf32> -> vector<8x32xf32>
    %cst_9 = arith.constant 0.000000e+00 : f32
    %10 = vector.broadcast %cst_9 : f32 to vector<8x32xf32>
    %11 = arith.maximumf %9, %10 : vector<8x32xf32>
    %c1_10 = arith.constant 1 : index
    %c0_11 = arith.constant 0 : index
    %c0_12 = arith.constant 0 : index
    %12 = vector.load %arg1[%c1_10, %c0_11, %c0_12] : memref<7x32x32xf32, #tpu.memory_space<vmem>>, vector<1x32x32xf32>
    %13 = vector.shape_cast %12 : vector<1x32x32xf32> to vector<32x32xf32>
    %cst_13 = arith.constant dense<0.000000e+00> : vector<8x32xf32>
    %14 = tpu.matmul %11, %13, %cst_13 {dimension_numbers = #tpu.dot_dimension_numbers<[1], [0], [0], [1], [0, 0, 1, 1], [], []>} : vector<8x32xf32>, vector<32x32xf32>, vector<8x32xf32> -> vector<8x32xf32>
    %c6 = arith.constant 6 : index
    %c0_14 = arith.constant 0 : index
    %c0_15 = arith.constant 0 : index
    %15 = vector.load %arg1[%c6, %c0_14, %c0_15] : memref<7x32x32xf32, #tpu.memory_space<vmem>>, vector<1x8x32xf32>
    %16 = vector.shape_cast %15 : vector<1x8x32xf32> to vector<8x32xf32>
    %17 = arith.addf %14, %16 : vector<8x32xf32>
    %cst_16 = arith.constant 0.000000e+00 : f32
    %18 = vector.broadcast %cst_16 : f32 to vector<8x32xf32>
    %19 = arith.maximumf %17, %18 : vector<8x32xf32>
    %c2_17 = arith.constant 2 : index
    %c0_18 = arith.constant 0 : index
    %c0_19 = arith.constant 0 : index
    %20 = vector.load %arg1[%c2_17, %c0_18, %c0_19] : memref<7x32x32xf32, #tpu.memory_space<vmem>>, vector<1x32x32xf32>
    %21 = vector.shape_cast %20 : vector<1x32x32xf32> to vector<32x32xf32>
    %cst_20 = arith.constant dense<0.000000e+00> : vector<8x32xf32>
    %22 = tpu.matmul %19, %21, %cst_20 {dimension_numbers = #tpu.dot_dimension_numbers<[1], [0], [0], [1], [0, 0, 1, 1], [], []>} : vector<8x32xf32>, vector<32x32xf32>, vector<8x32xf32> -> vector<8x32xf32>
    %c6_21 = arith.constant 6 : index
    %c8 = arith.constant 8 : index
    %c0_22 = arith.constant 0 : index
    %23 = vector.load %arg1[%c6_21, %c8, %c0_22] : memref<7x32x32xf32, #tpu.memory_space<vmem>>, vector<1x8x32xf32>
    %24 = vector.shape_cast %23 : vector<1x8x32xf32> to vector<8x32xf32>
    %25 = arith.addf %22, %24 : vector<8x32xf32>
    %cst_23 = arith.constant -1.000000e+01 : f32
    %cst_24 = arith.constant 1.000000e+01 : f32
    %26 = vector.broadcast %cst_23 : f32 to vector<8x32xf32>
    %27 = arith.maximumf %26, %25 : vector<8x32xf32>
    %28 = vector.broadcast %cst_24 : f32 to vector<8x32xf32>
    %29 = arith.minimumf %28, %27 : vector<8x32xf32>
    %cst_25 = arith.constant 5.000000e-01 : f32
    %30 = vector.broadcast %cst_25 : f32 to vector<8x32xf32>
    %31 = arith.mulf %30, %29 : vector<8x32xf32>
    %32 = math.exp %31 : vector<8x32xf32>
    %c16_i32 = arith.constant 16 : i32
    %33 = vector.broadcast %c16_i32 : i32 to vector<8x32xi32>
    %34 = arith.cmpi sge, %6, %33 : vector<8x32xi32>
    %c20_i32 = arith.constant 20 : i32
    %35 = vector.broadcast %c20_i32 : i32 to vector<8x32xi32>
    %36 = arith.cmpi slt, %6, %35 : vector<8x32xi32>
    %37 = arith.andi %34, %36 : vector<8x32xi1>
    %cst_26 = arith.constant 0.000000e+00 : f32
    %38 = vector.broadcast %cst_26 : f32 to vector<8x32xf32>
    %39 = arith.select %37, %25, %38 : vector<8x32xi1>, vector<8x32xf32>
    %40 = arith.addf %3, %39 : vector<8x32xf32>
    %41 = arith.mulf %5, %32 : vector<8x32xf32>
    %42 = arith.addf %40, %41 : vector<8x32xf32>
    %c3 = arith.constant 3 : index
    %c0_27 = arith.constant 0 : index
    %c0_28 = arith.constant 0 : index
    %43 = vector.load %arg1[%c3, %c0_27, %c0_28] : memref<7x32x32xf32, #tpu.memory_space<vmem>>, vector<1x32x32xf32>
    %44 = vector.shape_cast %43 : vector<1x32x32xf32> to vector<32x32xf32>
    %cst_29 = arith.constant dense<0.000000e+00> : vector<8x32xf32>
    %45 = tpu.matmul %42, %44, %cst_29 {dimension_numbers = #tpu.dot_dimension_numbers<[1], [0], [0], [1], [0, 0, 1, 1], [], []>} : vector<8x32xf32>, vector<32x32xf32>, vector<8x32xf32> -> vector<8x32xf32>
    %cst_30 = arith.constant 0.000000e+00 : f32
    %46 = vector.broadcast %cst_30 : f32 to vector<8x32xf32>
    %47 = arith.maximumf %45, %46 : vector<8x32xf32>
    %c4 = arith.constant 4 : index
    %c0_31 = arith.constant 0 : index
    %c0_32 = arith.constant 0 : index
    %48 = vector.load %arg1[%c4, %c0_31, %c0_32] : memref<7x32x32xf32, #tpu.memory_space<vmem>>, vector<1x32x32xf32>
    %49 = vector.shape_cast %48 : vector<1x32x32xf32> to vector<32x32xf32>
    %cst_33 = arith.constant dense<0.000000e+00> : vector<8x32xf32>
    %50 = tpu.matmul %47, %49, %cst_33 {dimension_numbers = #tpu.dot_dimension_numbers<[1], [0], [0], [1], [0, 0, 1, 1], [], []>} : vector<8x32xf32>, vector<32x32xf32>, vector<8x32xf32> -> vector<8x32xf32>
    %c6_34 = arith.constant 6 : index
    %c16 = arith.constant 16 : index
    %c0_35 = arith.constant 0 : index
    %51 = vector.load %arg1[%c6_34, %c16, %c0_35] : memref<7x32x32xf32, #tpu.memory_space<vmem>>, vector<1x8x32xf32>
    %52 = vector.shape_cast %51 : vector<1x8x32xf32> to vector<8x32xf32>
    %53 = arith.addf %50, %52 : vector<8x32xf32>
    %cst_36 = arith.constant 0.000000e+00 : f32
    %54 = vector.broadcast %cst_36 : f32 to vector<8x32xf32>
    %55 = arith.maximumf %53, %54 : vector<8x32xf32>
    %c5 = arith.constant 5 : index
    %c0_37 = arith.constant 0 : index
    %c0_38 = arith.constant 0 : index
    %56 = vector.load %arg1[%c5, %c0_37, %c0_38] : memref<7x32x32xf32, #tpu.memory_space<vmem>>, vector<1x32x32xf32>
    %57 = vector.shape_cast %56 : vector<1x32x32xf32> to vector<32x32xf32>
    %cst_39 = arith.constant dense<0.000000e+00> : vector<8x32xf32>
    %58 = tpu.matmul %55, %57, %cst_39 {dimension_numbers = #tpu.dot_dimension_numbers<[1], [0], [0], [1], [0, 0, 1, 1], [], []>} : vector<8x32xf32>, vector<32x32xf32>, vector<8x32xf32> -> vector<8x32xf32>
    %c6_40 = arith.constant 6 : index
    %c24 = arith.constant 24 : index
    %c0_41 = arith.constant 0 : index
    %59 = vector.load %arg1[%c6_40, %c24, %c0_41] : memref<7x32x32xf32, #tpu.memory_space<vmem>>, vector<1x8x32xf32>
    %60 = vector.shape_cast %59 : vector<1x8x32xf32> to vector<8x32xf32>
    %61 = arith.addf %58, %60 : vector<8x32xf32>
    %c20_i32_42 = arith.constant 20 : i32
    %62 = vector.broadcast %c20_i32_42 : i32 to vector<8x32xi32>
    %63 = arith.cmpi sge, %6, %62 : vector<8x32xi32>
    %c24_i32 = arith.constant 24 : i32
    %64 = vector.broadcast %c24_i32 : i32 to vector<8x32xi32>
    %65 = arith.cmpi slt, %6, %64 : vector<8x32xi32>
    %66 = arith.andi %63, %65 : vector<8x32xi1>
    %67 = arith.select %66, %29, %25 : vector<8x32xi1>, vector<8x32xf32>
    %68 = arith.addf %61, %67 : vector<8x32xf32>
    %c0_43 = arith.constant 0 : index
    %c0_44 = arith.constant 0 : index
    %69 = vector.load %arg2[%c0_43, %c0_44] : memref<8x32xf32, #tpu.memory_space<vmem>>, vector<8x32xf32>
    tpu.vector_store %arg2[%c0_43, %c0_44], %68 {strides = array<i32>} : memref<8x32xf32, #tpu.memory_space<vmem>>, vector<8x32xf32>,
    return
  }
}

</mosaic_0001>

<bundles_post_ra>
// kernel: cvae_forward.1
= control target key start
LH: loop header
LB: loop body
LE: loop exit
PB: predicated region body
PF: predicated region fallthrough
CT: control target
= control target key end

     0   :  { %v687_v0 = vmov 0.0|0.0   ;;  %vm688_vm0 = vmmov 0   ;;  %v689_v4 = vmov 0.0   ;;  %vm22_vm1 = vcmask 261120   ;;  %s832_s1 = inlined_call_operand.vmem [shape: f32[7,32,32], index: 1, kind: input, shape index: {}]   ;;  %s833_s0 = inlined_call_operand.vmem [shape: f32[3,8,32], index: 0, kind: input, shape index: {}]   ;;  %s834_s2 = inlined_call_operand.vmem [shape: f32[8,32], index: 2, kind: output, shape index: {}]  }
   0x1   :  { %646 = vmatprep.subr.bf16.mxu0 %v687_v0  ;;  %v18_v1 = vld [vmem:[%s832_s1] sm:$0xff]  ;;  %v19_v2 = vld [vmem:[%s832_s1 + $0x8] sm:$0xff]  ;;  %v20_v3 = vld [vmem:[%s832_s1 + $0x10] sm:$0xff]  ;;  %588 = vmatprep.mubr.msk.f32.mxu0 %vm688_vm0, %v689_v4  ;;  %v16_v38 = vlaneseq }
   0x2   :  { %v647_v5 = vpack.c.bf16 %v19_v2, %v18_v1  ;;  %v21_v6 = vld [vmem:[%s832_s1 + $0x18] sm:$0xff]  ;;  %652 = vmatprep.subr.bf16.mxu1 %v687_v0  ;;  %599 = vmatprep.mubr.msk.f32.mxu1 %vm688_vm0, %v689_v4  ;;  %v520_v7 = vld [vmem:[%s832_s1 + $0x20] sm:$0xff]  ;;  %v521_v8 = vld [vmem:[%s832_s1 + $0x28] sm:$0xff] }
   0x3   :  { %v650_v9 = vpack.c.bf16 %v21_v6, %v20_v3  ;;  %v653_v10 = vpack.c.bf16 %v521_v8, %v520_v7  ;;  %v11_v11 = vld [vmem:[%s833_s0] sm:$0xff]  ;;  %v522_v12 = vld [vmem:[%s832_s1 + $0x30] sm:$0xff]  ;;  %v523_v13 = vld [vmem:[%s832_s1 + $0x38] sm:$0xff]  ;;  %v17_v39 = vand.u32 127, %v16_v38 }
   0x4   :  { %648 = vmatpush3.bf16.msra.mxu0 %v647_v5  ;;  %v656_v14 = vpack.c.bf16 %v523_v13, %v522_v12  ;;  %v526_v15 = vld [vmem:[%s832_s1 + $0x40] sm:$0xff]  ;;  %v527_v16 = vld [vmem:[%s832_s1 + $0x48] sm:$0xff]  ;;  %v528_v21 = vld [vmem:[%s832_s1 + $0x50] sm:$0xff] }
   0x5   :  { %649 = vmatprep.subr.bf16.mxu0 %v687_v0  ;;  %654 = vmatpush3.bf16.msra.mxu1 %v653_v10  ;;  %v659_v17 = vpack.c.bf16 %v527_v16, %v526_v15  ;;  %v529_v22 = vld [vmem:[%s832_s1 + $0x58] sm:$0xff]  ;;  %v524_v24 = vld [vmem:[%s832_s1 + $0xc0] sm:$0xff]  ;;  %v534_v30 = vld [vmem:[%s832_s1 + $0x68] sm:$0xff]  ;;  %vm507_vm2 = vcmp.ge.s32.totalorder %v17_v39, 20  ;;  %vm508_vm3 = vcmp.lt.s32.totalorder %v17_v39, 24  ;;  %vm262_vm5 = vcmp.ge.s32.totalorder %v17_v39, 16 }
   0x6   :  { %655 = vmatprep.subr.bf16.mxu1 %v687_v0  ;;  %v662_v23 = vpack.c.bf16 %v529_v22, %v528_v21  ;;  %v533_v29 = vld [vmem:[%s832_s1 + $0x60] sm:$0xff]  ;;  %v535_v32 = vld [vmem:[%s832_s1 + $0x70] sm:$0xff]  ;;  %v536_v33 = vld [vmem:[%s832_s1 + $0x78] sm:$0xff]  ;;  %vm263_vm6 = vcmp.lt.s32.totalorder %v17_v39, 20 }
   0x7   :  { %v665_v31 = vpack.c.bf16 %v534_v30, %v533_v29  ;;  %v668_v34 = vpack.c.bf16 %v536_v33, %v535_v32  ;;  %v538_v35 = vld [vmem:[%s832_s1 + $0x80] sm:$0xff]  ;;  %v539_v36 = vld [vmem:[%s832_s1 + $0x88] sm:$0xff]  ;;  %vm509_vm4 = vmand %vm507_vm2, %vm508_vm3 }
   0x8   :  { %651 = vmatpush3.bf16.msra.mxu0 %v650_v9  ;;  %v671_v37 = vpack.c.bf16 %v539_v36, %v538_v35  ;;  %v530_v40 = vld [vmem:[%s832_s1 + $0xc8] sm:$0xff]  ;;  %vm264_vm7 = vmand %vm262_vm5, %vm263_vm6  ;;  %v518_v48 = vld [vmem:[%s833_s0 + $0x10] sm:$0xff] }
   0x9   :  { %658 = vmatprep.subr.bf16.mxu0 %v687_v0  ;;  %657 = vmatpush3.bf16.msra.mxu1 %v656_v14  ;;  %v517_v49 = vld [vmem:[%s833_s0 + $0x8] sm:$0xff]  ;;  %v540_v55 = vld [vmem:[%s832_s1 + $0x90] sm:$0xff]  ;;  %v541_v56 = vld [vmem:[%s832_s1 + $0x98] sm:$0xff] }
   0xa   :  { %664 = vmatprep.subr.bf16.mxu1 %v687_v0  ;;  %v674_v57 = vpack.c.bf16 %v541_v56, %v540_v55  ;;  %v544_v58 = vld [vmem:[%s832_s1 + $0xa0] sm:$0xff]  ;;  %v545_v59 = vld [vmem:[%s832_s1 + $0xa8] sm:$0xff]  ;;  %v546_v1 = vld [vmem:[%s832_s1 + $0xb0] sm:$0xff] }
   0xb   :  { %589 = vmatmul.mubr.msk.f32.vlgmr.msra.gmra.mrb[0].mxu0 %vm22_vm1, %v11_v11  ;;  %v677_v60 = vpack.c.bf16 %v545_v59, %v544_v58  ;;  %v547_v2 = vld [vmem:[%s832_s1 + $0xb8] sm:$0xff] }
   0xc   :  { %610 = vmatprep.mubr.msk.f32.mxu0 %vm688_vm0, %v689_v4  ;;  %660 = vmatpush3.bf16.msra.mxu0 %v659_v17  ;;  %v680_v3 = vpack.c.bf16 %v547_v2, %v546_v1  ;;  %v548_v8 = vld [vmem:[%s832_s1 + $0xd8] sm:$0xff] }
   0xd   :  { %661 = vmatprep.subr.bf16.mxu0 %v687_v0 }
  0x10   :  { %663 = vmatpush3.bf16.msra.mxu0 %v662_v23 }
  0x11   :  { %670 = vmatprep.subr.bf16.mxu0 %v687_v0 }
  0xde   :  { %v92_v18 = vpop.f32.mrb[0].mxu0 }
  0xdf   :  { %v96_v19 = vmax.f32 %v92_v18, 0.0  ;;  %v590_v20 = vpop.f32.mrb[1].mxu0 }
  0xe1   :  { %600 = vmatmul.mubr.msk.f32.vlgmr.msra.gmra.mrb[0].mxu1 %vm22_vm1, %v96_v19 }
  0xe2   :  { %621 = vmatprep.mubr.msk.f32.mxu1 %vm688_vm0, %v689_v4  ;;  %666 = vmatpush3.bf16.msra.mxu1 %v665_v31 }
  0xe3   :  { %667 = vmatprep.subr.bf16.mxu1 %v687_v0 }
  0xe6   :  { %669 = vmatpush3.bf16.msra.mxu1 %v668_v34 }
  0xe7   :  { %676 = vmatprep.subr.bf16.mxu1 %v687_v0 }
 0x1b4   :  { %v173_v25 = vpop.f32.mrb[0].mxu1 }
 0x1b5   :  { %v174_v26 = vadd.f32 %v524_v24, %v173_v25  ;;  %v601_v27 = vpop.f32.mrb[1].mxu1 }
 0x1b7   :  { %v177_v28 = vmax.f32 %v174_v26, 0.0 }
 0x1b9   :  { %611 = vmatmul.mubr.msk.f32.vlgmr.msra.gmra.mrb[2].mxu0 %vm22_vm1, %v177_v28 }
 0x1ba   :  { %632 = vmatprep.mubr.msk.f32.mxu0 %vm688_vm0, %v689_v4  ;;  %672 = vmatpush3.bf16.msra.mxu0 %v671_v37 }
 0x1bb   :  { %673 = vmatprep.subr.bf16.mxu0 %v687_v0 }
 0x1be   :  { %675 = vmatpush3.bf16.msra.mxu0 %v674_v57 }
 0x28c   :  { %v253_v41 = vpop.f32.mrb[2].mxu0 }
 0x28d   :  { %v254_v42 = vadd.f32 %v530_v40, %v253_v41  ;;  %v612_v43 = vpop.f32.mrb[3].mxu0 }
 0x28f   :  { %v532_v44 = vclamps-f32 %v254_v42, 10.0  ;;  %v265_v50 = vsel %vm264_vm7, %v254_v42, 0.0 }
 0x290   :  { %v266_v52 = vadd.f32 %v517_v49, %v265_v50 }
 0x291   :  { %v259_v45 = vmul.f32 0.5, %v532_v44  ;;  %v510_v46 = vsel %vm509_vm4, %v532_v44, %v254_v42 }
 0x293   :  { %v260_v47 = vmul.f32 1.442695, %v259_v45 }
 0x295   :  { %685 = vpow2.f32 %v260_v47 }
 0x29f   :  { %v686_v51 = vpop.eup %685 }
 0x2a0   :  { %v267_v53 = vmul.f32 %v686_v51, %v518_v48 }
 0x2a2   :  { %v268_v54 = vadd.f32 %v267_v53, %v266_v52 }
 0x2a4   :  { %622 = vmatmul.mubr.msk.f32.vlgmr.msra.gmra.mrb[2].mxu1 %vm22_vm1, %v268_v54 }
 0x2a5   :  { %643 = vmatprep.mubr.msk.f32.mxu1 %vm688_vm0, %v689_v4  ;;  %678 = vmatpush3.bf16.msra.mxu1 %v677_v60  ;;  %v542_v4 = vld [vmem:[%s832_s1 + $0xd0] sm:$0xff] }
 0x2a6   :  { %679 = vmatprep.subr.bf16.mxu1 %v687_v0 }
 0x2a9   :  { %681 = vmatpush3.bf16.msra.mxu1 %v680_v3 }
 0x377   :  { %v343_v61 = vpop.f32.mrb[2].mxu1 }
 0x378   :  { %v347_v62 = vmax.f32 %v343_v61, 0.0  ;;  %v623_v63 = vpop.f32.mrb[3].mxu1 }
 0x37a   :  { %633 = vmatmul.mubr.msk.f32.vlgmr.msra.gmra.mrb[4].mxu0 %vm22_vm1, %v347_v62 }
 0x44d   :  { %v423_v0 = vpop.f32.mrb[4].mxu0 }
 0x44e   :  { %v424_v5 = vadd.f32 %v542_v4, %v423_v0  ;;  %v634_v6 = vpop.f32.mrb[5].mxu0 }
 0x450   :  { %v427_v7 = vmax.f32 %v424_v5, 0.0 }
 0x452   :  { %644 = vmatmul.mubr.msk.f32.vlgmr.msra.gmra.mrb[4].mxu1 %vm22_vm1, %v427_v7 }
 0x525   :  { %v503_v9 = vpop.f32.mrb[4].mxu1 }
 0x526   :  { %v504_v10 = vadd.f32 %v548_v8, %v503_v9  ;;  %v645_v11 = vpop.f32.mrb[5].mxu1 }
 0x528   :  { %v511_v12 = vadd.f32 %v510_v46, %v504_v10 }
 0x52a   :  { %512 = vst.msk [vmem:[%s834_s2] sm:$0xff] %vm22_vm1, %v511_v12 }

</bundles_post_ra>
